<compile_context>
chip_gen: v7x
topology: tpu7x:2x2x1
jax: 0.10.0
libtpu: 0.0.40
codegen_flags: <defaults>
</compile_context>

<pallas_src>
import functools
import math

import jax
import jax.numpy as jnp
from jax import lax
from jax.experimental import pallas as pl
from jax.experimental.pallas import tpu as pltpu


def _rte_kernel(n_rows, t_ref, x_ref, tbl_ref, o_ref, lin_ref):
    """One (tile_n, H) tile: gather table rows by t, then out = x + gathered."""
    tile_n = x_ref.shape[0]
    base = pl.program_id(0) * tile_n

    def gather_row(r, carry):
        # Clamp so the ragged tail block never reads t past N (and therefore
        # never produces an out-of-range table index); those rows' outputs are
        # masked off by Pallas on writeback anyway.
        row = jnp.minimum(base + r, n_rows - 1)
        idx = t_ref[row]                                   # SMEM scalar read
        lin_ref[pl.ds(r, 1), :] = tbl_ref[pl.ds(idx, 1), :]  # VMEM-resident table
        return carry

    lax.fori_loop(0, tile_n, gather_row, 0)

    # Single vectorized, memory-roofline add over the whole tile.
    o_ref[...] = x_ref[...] + lin_ref[...]


def make_sinusoidal_table(n_hid: int, max_len: int) -> jnp.ndarray:
    position = jnp.arange(0.0, max_len, dtype=jnp.float32)[:, None]       # (max_len, 1)
    div_term = jnp.exp(jnp.arange(0, n_hid, 2, dtype=jnp.float32)
                       * -(math.log(10000.0) / n_hid))                     # (n_hid/2,)
    emb = jnp.zeros((max_len, n_hid), dtype=jnp.float32)
    emb = emb.at[:, 0::2].set(jnp.sin(position * div_term) / math.sqrt(n_hid))
    emb = emb.at[:, 1::2].set(jnp.cos(position * div_term) / math.sqrt(n_hid))
    return emb


_MIN_ROWS_PER_CORE = 256  # below this, splitting across TensorCores isn't worth it


def _pick_tile(n_rows: int, tile_rows: int) -> int:
    tile = min(tile_rows, n_rows)
    if tile >= n_rows:
        if n_rows >= 2 * _MIN_ROWS_PER_CORE:
            # v7x megacore: make sure the "parallel" axis has >= 2 blocks.
            tile = max(8, (((n_rows + 1) // 2) // 8) * 8)
        else:
            tile = n_rows               # single full-array block (always legal)
    else:
        tile = max(8, (tile // 8) * 8)  # (8, 128) sublane rule when tile < N
    return max(tile, 1)


@functools.partial(jax.jit, static_argnames=("tile_rows",))
def rel_temporal_encoding(x, t, emb_table, w, b, *, tile_rows: int = 2048):
    """x: (N, H) f32, t: (N,) int, emb_table: (max_len, H), w: (H, H), b: (H,)."""
    n_rows, n_hid = x.shape
    max_len = emb_table.shape[0]

    # Fold the (frozen-table) Linear into the table once per call: a tiny
    # (max_len, H) x (H, H) matmul; the hot path becomes out = x + lin_table[t].
    lin_table = jnp.dot(emb_table, w.T, precision=lax.Precision.HIGHEST) + b

    tile_n = _pick_tile(n_rows, tile_rows)
    num_tiles = pl.cdiv(n_rows, tile_n)

    grid_spec = pltpu.PrefetchScalarGridSpec(
        num_scalar_prefetch=1,                                          # t -> SMEM
        grid=(num_tiles,),
        in_specs=[
            pl.BlockSpec((tile_n, n_hid), lambda i, t_ref: (i, 0)),     # x tile
            pl.BlockSpec((max_len, n_hid), lambda i, t_ref: (0, 0)),    # resident table
        ],
        out_specs=pl.BlockSpec((tile_n, n_hid), lambda i, t_ref: (i, 0)),
        scratch_shapes=[pltpu.VMEM((tile_n, n_hid), jnp.float32)],      # gathered rows
    )

    return pl.pallas_call(
        functools.partial(_rte_kernel, n_rows),
        out_shape=jax.ShapeDtypeStruct((n_rows, n_hid), x.dtype),
        grid_spec=grid_spec,
        compiler_params=pltpu.CompilerParams(
            dimension_semantics=("parallel",),   # v7x: shard row tiles over both TCs
            vmem_limit_bytes=32 * 1024 * 1024,   # explicit for v5e's 16 MiB default
        ),
    )(t.astype(jnp.int32), x, lin_table)


if __name__ == "__main__":
    n_hid = 32
    max_len = 4020

    key = jax.random.PRNGKey(0)
    kx, kt, kw, kb = jax.random.split(key, 4)

    # Deterministic synthetic parameters (nn.Linear-style uniform init).
    bound = 1.0 / math.sqrt(n_hid)
    w = jax.random.uniform(kw, (n_hid, n_hid), jnp.float32, -bound, bound)
    b = jax.random.uniform(kb, (n_hid,), jnp.float32, -bound, bound)
    emb_table = make_sinusoidal_table(n_hid, max_len)

    for N in (8, 512):  # single-block path and multi-block (megacore-split) path
        kxn, ktn = jax.random.split(jax.random.fold_in(kx, N))
        x = jax.random.normal(kxn, (N, n_hid), jnp.float32)
        t = jax.random.randint(ktn, (N,), 0, max_len, jnp.int32)

        out = jax.block_until_ready(rel_temporal_encoding(x, t, emb_table, w, b))

        # Pure-JAX reference (matches the PyTorch forward).
        ref = x + jnp.dot(jnp.take(emb_table, t, axis=0), w.T,
                          precision=lax.Precision.HIGHEST) + b
        assert out.shape == (N, n_hid)
        assert jnp.allclose(out, ref, atol=1e-5, rtol=1e-5)

    print("KERNEL_OK")
</pallas_src>

<mosaic_0001>
module attributes {stable_mosaic.version = 11 : i64} {
  func.func @_rte_kernel(%arg0: i32, %arg1: memref<8xi32, #tpu.memory_space<smem>>, %arg2: memref<8x32xf32, #tpu.memory_space<vmem>>, %arg3: memref<4020x32xf32, #tpu.memory_space<vmem>>, %arg4: memref<8x32xf32, #tpu.memory_space<vmem>>, %arg5: memref<8x32xf32, #tpu.memory_space<vmem>>) attributes {dimension_semantics = [#tpu.dimension_semantics<parallel>], iteration_bounds = array<i64: 1>, scalar_prefetch = 1 : i64, scratch_operands = 1 : i64, tpu.core_type = #tpu.core_type<tc>, window_params = [{transform_indices = @transform_0, window_bounds = array<i64: 8, 32>}, {pipeline_mode = #tpu.pipeline_mode<synchronous>, transform_indices = @transform_1, window_bounds = array<i64: 4020, 32>}, {transform_indices = @transform_2, window_bounds = array<i64: 8, 32>}]} {
    %c8_i32 = arith.constant 8 : i32
    %0 = arith.muli %arg0, %c8_i32 : i32
    %c0_i32 = arith.constant 0 : i32
    %c8_i32_0 = arith.constant 8 : i32
    %1 = arith.addi %c0_i32, %c8_i32_0 : i32
    %c1_i32 = arith.constant 1 : i32
    scf.for %arg6 = %c0_i32 to %1 step %c1_i32  : i32 {
      %6 = arith.addi %0, %arg6 : i32
      %c7_i32 = arith.constant 7 : i32
      %7 = arith.minsi %6, %c7_i32 : i32
      %8 = arith.index_cast %7 : i32 to index
      %9 = memref.load %arg1[%8] : memref<8xi32, #tpu.memory_space<smem>>
      %10 = arith.index_cast %9 : i32 to index
      %c0_7 = arith.constant 0 : index
      %11 = vector.load %arg3[%10, %c0_7] : memref<4020x32xf32, #tpu.memory_space<vmem>>, vector<1x32xf32>
      %12 = arith.index_cast %arg6 : i32 to index
      %c0_8 = arith.constant 0 : index
      %13 = vector.load %arg5[%12, %c0_8] : memref<8x32xf32, #tpu.memory_space<vmem>>, vector<1x32xf32>
      tpu.vector_store %arg5[%12, %c0_8], %11 {strides = array<i32>} : memref<8x32xf32, #tpu.memory_space<vmem>>, vector<1x32xf32>,
    }
    %c8_i32_1 = arith.constant 8 : i32
    %c0 = arith.constant 0 : index
    %c0_2 = arith.constant 0 : index
    %2 = vector.load %arg2[%c0, %c0_2] : memref<8x32xf32, #tpu.memory_space<vmem>>, vector<8x32xf32>
    %c0_3 = arith.constant 0 : index
    %c0_4 = arith.constant 0 : index
    %3 = vector.load %arg5[%c0_3, %c0_4] : memref<8x32xf32, #tpu.memory_space<vmem>>, vector<8x32xf32>
    %4 = arith.addf %2, %3 : vector<8x32xf32>
    %c0_5 = arith.constant 0 : index
    %c0_6 = arith.constant 0 : index
    %5 = vector.load %arg4[%c0_5, %c0_6] : memref<8x32xf32, #tpu.memory_space<vmem>>, vector<8x32xf32>
    tpu.vector_store %arg4[%c0_5, %c0_6], %4 {strides = array<i32>} : memref<8x32xf32, #tpu.memory_space<vmem>>, vector<8x32xf32>,
    return
  }
  func.func @transform_0(%arg0: i32, %arg1: memref<8xi32, #tpu.memory_space<smem>>) -> (i32, i32) {
    %c0_i32 = arith.constant 0 : i32
    %c0_i32_0 = arith.constant 0 : i32
    return %arg0, %c0_i32 : i32, i32
  }
  func.func @transform_1(%arg0: i32, %arg1: memref<8xi32, #tpu.memory_space<smem>>) -> (i32, i32) {
    %c0_i32 = arith.constant 0 : i32
    %c0_i32_0 = arith.constant 0 : i32
    %c0_i32_1 = arith.constant 0 : i32
    return %c0_i32, %c0_i32_0 : i32, i32
  }
  func.func @transform_2(%arg0: i32, %arg1: memref<8xi32, #tpu.memory_space<smem>>) -> (i32, i32) {
    %c0_i32 = arith.constant 0 : i32
    %c0_i32_0 = arith.constant 0 : i32
    return %arg0, %c0_i32 : i32, i32
  }
}

</mosaic_0001>

<bundles_post_ra>
// kernel: rel_temporal_encoding.1
= control target key start
LH: loop header
LB: loop body
LE: loop exit
PB: predicated region body
PF: predicated region fallthrough
CT: control target
= control target key end

     0   :  { %s160_s0 = inlined_call_operand.vmem [shape: s32[8], index: 0, kind: input, shape index: {}]   ;;  %s161_s1 = inlined_call_operand.vmem [shape: f32[8,32], index: 1, kind: input, shape index: {}]   ;;  %s162_s2 = inlined_call_operand.vmem [shape: f32[4020,32], index: 2, kind: input, shape index: {}]   ;;  %s163_s3 = inlined_call_operand.hbm [shape: f32[8,32], index: 3, kind: output, shape index: {}]  }
   0x1   :  { %s8_s14 = sshll.u32 %s160_s0, 4  ;;  %s9_s14 = int_to_ptr.vmem [resolvable:$true] %s8_s14 }
   0x2   :  { %s71_s15 = scalar_lea.vmem %s9_s14, 16  ;;  %p76_p1 = scmp.lt.s32.totalorder %s9_s14, %s9_s14 }
   0x3   :  { %p72_p0 = scmp.ne.s32.totalorder %s9_s14, %s71_s15  ;;  %p77_p2 = scmp.lt.s32.totalorder %s71_s15, %s71_s15 }
   0x5   :  { %p78_p3 = por %p77_p2, %p76_p1 }
   0x7   :  { %p79_p4 = pnand %p78_p3, %p72_p0 }
   0x9   :  { %82 = shalt.err (!%p79_p4)  }
   0xa   :  { %s117_s16 = smov [#allocation4]  }
   0xb   :  { %11 = dma.vmem_to_smem %s9_s14, 16, %s117_s16, [#allocation3] }
   0xc   :  { %109 = dma.done.wait [#allocation3], 16 }
   0xd   :  { %110 = vsyncadd [#allocation3], 4294967280 }
   0xe   :  { %13 = sfence }
   0xf   :  { %14 = vsyncpa [#allocation6], 0  ;;  %s113_s17 = smov 0  }
  0x10 LB: > { %p27_p5 = scmp.lt.s32.totalorder %s115_s17, 7  ;;  %vm33_vm0 = vcmask 253952   ;;  %s32_s22 = scalar_lea.vmem [#allocation2], %s115_s17  ;;  %s115_s17 = sphi %s113_s17, %s25_s17  }
  0x12   : > { %s28_s0 = scalar_select %p27_p5, %s115_s17, 7 }
  0x13   : > { %s25_s17 = sadd.s32 1, %s115_s17  }
  0x14   : > { %s29_s18 = sld [smem:[#allocation4 + %s28_s0]]  ;;  %p22_p6 = scmp.ge.s32.totalorder %s25_s17, 8  }
  0x15   :  { %v35_v1 = vld [vmem:[%s161_s1] sm:$0xff] (%p22_p6)  ;;  %vm38_vm1 = vcmask (%p22_p6), 261120   ;;  %s118_s25 = smov (%p22_p6), [#allocation5]  }
  0x16   :  { %24 = sbr.rel (!%p22_p6) target bundleno = 16 (0x10), region = 37  ;;  %s46_s26 = sshll.u32 (%p22_p6), %s118_s25, 4  ;;  %s47_s26 = int_to_ptr.vmem [resolvable:$true] %s46_s26 }
  0x17   :  { %s83_s27 = scalar_lea.vmem (%p22_p6), %s47_s26, 128  ;;  %p88_p8 = scmp.lt.s32.totalorder (%p22_p6), %s47_s26, %s47_s26 }
  0x18   :  { %p84_p7 = scmp.ne.s32.totalorder (%p22_p6), %s47_s26, %s83_s27  ;;  %p89_p9 = scmp.lt.s32.totalorder (%p22_p6), %s83_s27, %s83_s27 }
  0x1a   : > { %s30_s21 = scalar_lea.vmem %s162_s2, %s29_s18  ;;  %p90_p10 = por (%p22_p6), %p89_p9, %p88_p8 }
  0x1b   : > { %v31_v0 = vld [vmem:[%s30_s21] sm:$0x1] }
  0x1c   : > { %34 = vst.msk [vmem:[%s32_s22] sm:$0x1] %vm33_vm0, %v31_v0  ;;  %p91_p11 = pnand (%p22_p6), %p90_p10, %p84_p7 }
  0x23   :  { %v36_v2 = vld [vmem:[#allocation2] sm:$0xff] }
  0x24   :  { %v37_v3 = vadd.f32 %v36_v2, %v35_v1 }
  0x26   :  { %39 = vst.msk [vmem:[#allocation5] sm:$0xff] %vm38_vm1, %v37_v3 }
  0x27   :  { %94 = shalt.err (!%p91_p11)
}
  0x28   :  { %s95_s2 = scalar_lea.hbm %s163_s3, 128 }
  0x29   :  { %p96_p12 = scmp.ne.s32.totalorder %s163_s3, %s95_s2  ;;  %p99_p13 = scmp.lt.u32.totalorder %s95_s2, %s163_s3 }
  0x2b   :  { %p101_p0 = pnand %p99_p13, %p96_p12 }
  0x2d   :  { %104 = shalt.err (!%p101_p0)
}
  0x2e   :  { %49 = dma.vmem_to_hbm [thread:$0]  %s47_s26, 128, %s163_s3, [#allocation6]  }
  0x2f   :  { %111 = dma.done.wait [#allocation6], 128  }
  0x30   :  { %112 = vsyncadd [#allocation6], 4294967168 }
  0x31   :  { %53 = vsyncpa [#allocation6], 1 }

</bundles_post_ra>
